<compile_context>
chip_gen: v5e
topology: v5e:2x2
jax: 0.10.0
libtpu: 0.0.40
codegen_flags: <defaults>
</compile_context>

<pallas_src>
import jax
import jax.numpy as jnp
from jax import lax
from jax.experimental import pallas as pl
from jax.experimental.pallas import tpu as pltpu


def _round_up(x, m):
    return ((x + m - 1) // m) * m


def _make_critique_kernel(n_dense):
    """Fused MLP kernel: (Linear+ReLU)*n_dense -> Linear(1) -> Sigmoid.

    Refs:
      x_ref: [tm, F]           (compute dtype; batch tile, features padded)
      w_ref: [n_dense, F, F]   (compute dtype; padded hidden-layer weights)
      v_ref: [n_dense + 2, F]  (f32; rows 0..n-1 biases, row n = last-layer
                                weight as a row vector, row n+1 lane0 = last bias)
      o_ref: [1, 1, tm]        (f32; lane-dense transposed output tile)
    """

    def kernel(x_ref, w_ref, v_ref, o_ref):
        compute_dtype = x_ref.dtype
        h = x_ref[...]                                   # [tm, F]
        for i in range(n_dense):
            w = w_ref[i]                                 # [F, F]
            b = v_ref[i:i + 1, :]                        # [1, F] f32
            h = jnp.dot(h, w, preferred_element_type=jnp.float32) + b
            h = jnp.maximum(h, 0.0)                      # ReLU in f32 (VPU)
            if i + 1 < n_dense:
                h = h.astype(compute_dtype)              # back to MXU dtype
        # Final Linear(., 1), transposed: [1, F] x [tm, F]^T -> [1, tm]
        # (lane-dense output, single cheap MXU pass instead of an N=1 matmul).
        w_last_t = v_ref[n_dense:n_dense + 1, :]         # [1, F]  f32
        b_last = v_ref[n_dense + 1:n_dense + 2, 0:1]     # [1, 1]  f32
        logits_t = lax.dot_general(
            w_last_t, h, (((1,), (1,)), ((), ())),
            preferred_element_type=jnp.float32)          # [1, tm]
        y = jax.nn.sigmoid(logits_t + b_last)            # f32 sigmoid (EUP)
        o_ref[...] = y.reshape(o_ref.shape).astype(o_ref.dtype)

    return kernel


def pack_critique_params(params, compute_dtype=jnp.float32):
    """Pack per-layer (w, b) params into two contiguous, 128-padded slabs."""
    n_dense = len(params) - 1
    assert n_dense >= 1, "Critique needs at least one hidden dense layer"
    feat_dims = []
    for i, (w, _) in enumerate(params):
        feat_dims.append(w.shape[0])
        if i < n_dense:
            feat_dims.append(w.shape[1])
    fdim = _round_up(max(feat_dims), 128)

    w_slab = jnp.zeros((n_dense, fdim, fdim), compute_dtype)
    v_slab = jnp.zeros((n_dense + 2, fdim), jnp.float32)
    for i in range(n_dense):
        w, b = params[i]
        w_slab = w_slab.at[i, :w.shape[0], :w.shape[1]].set(
            w.astype(compute_dtype))
        v_slab = v_slab.at[i, :b.shape[1]].set(b[0].astype(jnp.float32))
    w_last, b_last = params[-1]                           # [in, 1], [1, 1]
    v_slab = v_slab.at[n_dense, :w_last.shape[0]].set(
        w_last[:, 0].astype(jnp.float32))
    v_slab = v_slab.at[n_dense + 1, 0].set(b_last[0, 0].astype(jnp.float32))
    return w_slab, v_slab, fdim


def critique_forward(x, params, *, compute_dtype=jnp.float32, tm=None):
    """Run the fused Critique MLP.

    x:      [batch, pose_dim]
    params: list of (w [in, out], b [1, out]); final layer has out == 1.
    returns [batch, 1] float32
    """
    batch = x.shape[0]
    n_dense = len(params) - 1
    # NOTE: in production, pack once and reuse across forward calls.
    w_slab, v_slab, fdim = pack_critique_params(params, compute_dtype)

    if tm is None:
        tm = min(512, _round_up(max(batch, 1), 128))
    tm = _round_up(tm, 128)
    batch_pad = _round_up(max(batch, 1), tm)
    num_tiles = batch_pad // tm

    # Zero-pad rows to a multiple of tm and features to the padded width
    # (zero columns hit zero weight rows -> exact).
    x_pad = jnp.zeros((batch_pad, fdim), compute_dtype)
    x_pad = x_pad.at[:batch, :x.shape[1]].set(x.astype(compute_dtype))

    kernel = _make_critique_kernel(n_dense)

    out = pl.pallas_call(
        kernel,
        out_shape=jax.ShapeDtypeStruct((num_tiles, 1, tm), jnp.float32),
        grid=(num_tiles,),
        in_specs=[
            pl.BlockSpec((tm, fdim), lambda i: (i, 0)),
            # Constant index maps -> params DMA'd once, VMEM-resident after.
            pl.BlockSpec((n_dense, fdim, fdim), lambda i: (0, 0, 0)),
            pl.BlockSpec((n_dense + 2, fdim), lambda i: (0, 0)),
        ],
        out_specs=pl.BlockSpec((1, 1, tm), lambda i: (i, 0, 0)),
        compiler_params=pltpu.CompilerParams(
            dimension_semantics=("parallel",)),
    )(x_pad, w_slab, v_slab)

    # [num_tiles, 1, tm] -> [batch_pad, 1] -> drop padded rows.
    yhat = out.reshape(batch_pad, 1)[:batch]
    return yhat


def init_critique_params(key, pose_dim, dense_layer_sizes):
    """Deterministic parameter init mirroring the nn.Linear shapes."""
    sizes = [pose_dim] + list(dense_layer_sizes) + [1]
    params = []
    for i in range(len(sizes) - 1):
        fan_in, fan_out = sizes[i], sizes[i + 1]
        key, kw, kb = jax.random.split(key, 3)
        bound = 1.0 / jnp.sqrt(jnp.float32(fan_in))
        # Stored transposed vs PyTorch: [in, out]
        w = jax.random.uniform(kw, (fan_in, fan_out), jnp.float32, -bound, bound)
        b = jax.random.uniform(kb, (1, fan_out), jnp.float32, -bound, bound)
        params.append((w, b))
    return params


def critique_reference(x, params):
    """Pure-JAX reference for correctness check."""
    h = x
    n = len(params)
    for i, (w, b) in enumerate(params):
        h = h @ w + b
        if i < n - 1:
            h = jnp.maximum(h, 0.0)
        else:
            h = jax.nn.sigmoid(h)
    return h


if __name__ == "__main__":
    # Shapes implied by the module: poses [N, joint_count, joint_dim]
    # flattened to [N, pose_dim]; joint_count=8, joint_dim=4 -> pose_dim=32.
    joint_count, joint_dim = 8, 4
    pose_dim = joint_count * joint_dim
    dense_layer_sizes = [64, 32]

    key = jax.random.PRNGKey(0)
    key, kx = jax.random.split(key)
    params = init_critique_params(key, pose_dim, dense_layer_sizes)

    # Case 1: toy batch, f32 end to end.
    batch = 8
    x = jax.random.normal(kx, (batch, pose_dim), jnp.float32)
    yhat = jax.block_until_ready(critique_forward(x, params))
    ref = critique_reference(x, params)
    assert yhat.shape == (batch, 1)
    assert jnp.allclose(yhat, ref, atol=1e-5, rtol=1e-5), "f32 mismatch"

    # Case 2: multi-tile batch with a non-multiple-of-tile tail, f32.
    key, kx2 = jax.random.split(key)
    x2 = jax.random.normal(kx2, (300, pose_dim), jnp.float32)
    yhat2 = jax.block_until_ready(critique_forward(x2, params, tm=128))
    ref2 = critique_reference(x2, params)
    assert yhat2.shape == (300, 1)
    assert jnp.allclose(yhat2, ref2, atol=1e-5, rtol=1e-5), "tiled f32 mismatch"

    # Case 3: bf16 matmul operands (v6e/v7x path), f32 accumulate + sigmoid.
    yhat3 = jax.block_until_ready(
        critique_forward(x2, params, compute_dtype=jnp.bfloat16, tm=128))
    assert yhat3.shape == (300, 1)
    assert jnp.max(jnp.abs(yhat3 - ref2)) < 5e-2, "bf16 path mismatch"

    print("KERNEL_OK")
</pallas_src>

<mosaic_0001>
module attributes {stable_mosaic.version = 11 : i64} {
  func.func @kernel(%arg0: i32, %arg1: memref<128x128xf32, #tpu.memory_space<vmem>>, %arg2: memref<2x128x128xf32, #tpu.memory_space<vmem>>, %arg3: memref<4x128xf32, #tpu.memory_space<vmem>>, %arg4: memref<1x1x128xf32, #tpu.memory_space<vmem>>) attributes {dimension_semantics = [#tpu.dimension_semantics<parallel>], iteration_bounds = array<i64: 1>, scalar_prefetch = 0 : i64, scratch_operands = 0 : i64, tpu.core_type = #tpu.core_type<tc>, window_params = [{transform_indices = @transform_0, window_bounds = array<i64: 128, 128>}, {pipeline_mode = #tpu.pipeline_mode<synchronous>, transform_indices = @transform_1, window_bounds = array<i64: 2, 128, 128>}, {pipeline_mode = #tpu.pipeline_mode<synchronous>, transform_indices = @transform_2, window_bounds = array<i64: 4, 128>}, {transform_indices = @transform_3, window_bounds = array<i64: 1, 1, 128>}]} {
    %c0 = arith.constant 0 : index
    %c0_0 = arith.constant 0 : index
    %0 = vector.load %arg1[%c0, %c0_0] : memref<128x128xf32, #tpu.memory_space<vmem>>, vector<128x128xf32>
    %c0_1 = arith.constant 0 : index
    %c0_2 = arith.constant 0 : index
    %c0_3 = arith.constant 0 : index
    %1 = vector.load %arg2[%c0_1, %c0_2, %c0_3] : memref<2x128x128xf32, #tpu.memory_space<vmem>>, vector<1x128x128xf32>
    %2 = vector.shape_cast %1 : vector<1x128x128xf32> to vector<128x128xf32>
    %c0_4 = arith.constant 0 : index
    %c0_5 = arith.constant 0 : index
    %3 = vector.load %arg3[%c0_4, %c0_5] : memref<4x128xf32, #tpu.memory_space<vmem>>, vector<1x128xf32>
    %cst = arith.constant dense<0.000000e+00> : vector<128x128xf32>
    %4 = tpu.matmul %0, %2, %cst {dimension_numbers = #tpu.dot_dimension_numbers<[1], [0], [0], [1], [0, 0, 1, 1], [], []>} : vector<128x128xf32>, vector<128x128xf32>, vector<128x128xf32> -> vector<128x128xf32>
    %5 = vector.broadcast %3 : vector<1x128xf32> to vector<128x128xf32>
    %6 = arith.addf %4, %5 : vector<128x128xf32>
    %cst_6 = arith.constant 0.000000e+00 : f32
    %7 = vector.broadcast %cst_6 : f32 to vector<128x128xf32>
    %8 = arith.maximumf %6, %7 : vector<128x128xf32>
    %c1 = arith.constant 1 : index
    %c0_7 = arith.constant 0 : index
    %c0_8 = arith.constant 0 : index
    %9 = vector.load %arg2[%c1, %c0_7, %c0_8] : memref<2x128x128xf32, #tpu.memory_space<vmem>>, vector<1x128x128xf32>
    %10 = vector.shape_cast %9 : vector<1x128x128xf32> to vector<128x128xf32>
    %c1_9 = arith.constant 1 : index
    %c0_10 = arith.constant 0 : index
    %11 = vector.load %arg3[%c1_9, %c0_10] : memref<4x128xf32, #tpu.memory_space<vmem>>, vector<1x128xf32>
    %cst_11 = arith.constant dense<0.000000e+00> : vector<128x128xf32>
    %12 = tpu.matmul %8, %10, %cst_11 {dimension_numbers = #tpu.dot_dimension_numbers<[1], [0], [0], [1], [0, 0, 1, 1], [], []>} : vector<128x128xf32>, vector<128x128xf32>, vector<128x128xf32> -> vector<128x128xf32>
    %13 = vector.broadcast %11 : vector<1x128xf32> to vector<128x128xf32>
    %14 = arith.addf %12, %13 : vector<128x128xf32>
    %cst_12 = arith.constant 0.000000e+00 : f32
    %15 = vector.broadcast %cst_12 : f32 to vector<128x128xf32>
    %16 = arith.maximumf %14, %15 : vector<128x128xf32>
    %c2 = arith.constant 2 : index
    %c0_13 = arith.constant 0 : index
    %17 = vector.load %arg3[%c2, %c0_13] : memref<4x128xf32, #tpu.memory_space<vmem>>, vector<1x128xf32>
    %c3 = arith.constant 3 : index
    %c0_14 = arith.constant 0 : index
    %18 = vector.load %arg3[%c3, %c0_14] : memref<4x128xf32, #tpu.memory_space<vmem>>, vector<1x1xf32>
    %cst_15 = arith.constant dense<0.000000e+00> : vector<1x128xf32>
    %19 = tpu.matmul %17, %16, %cst_15 {dimension_numbers = #tpu.dot_dimension_numbers<[1], [1], [0], [0], [0, 0, 1, 0], [], []>} : vector<1x128xf32>, vector<128x128xf32>, vector<1x128xf32> -> vector<1x128xf32>
    %20 = vector.broadcast %18 : vector<1x1xf32> to vector<1x128xf32>
    %21 = arith.addf %19, %20 : vector<1x128xf32>
    %22 = arith.negf %21 : vector<1x128xf32>
    %23 = math.exp %22 : vector<1x128xf32>
    %cst_16 = arith.constant 1.000000e+00 : f32
    %24 = vector.broadcast %cst_16 : f32 to vector<1x128xf32>
    %25 = arith.addf %24, %23 : vector<1x128xf32>
    %26 = arith.divf %24, %25 : vector<1x128xf32>
    %27 = vector.shape_cast %26 : vector<1x128xf32> to vector<1x1x128xf32>
    %c0_17 = arith.constant 0 : index
    %c0_18 = arith.constant 0 : index
    %c0_19 = arith.constant 0 : index
    %28 = vector.load %arg4[%c0_17, %c0_18, %c0_19] : memref<1x1x128xf32, #tpu.memory_space<vmem>>, vector<1x1x128xf32>
    tpu.vector_store %arg4[%c0_17, %c0_18, %c0_19], %27 {strides = array<i32>} : memref<1x1x128xf32, #tpu.memory_space<vmem>>, vector<1x1x128xf32>,
    return
  }
  func.func @transform_0(%arg0: i32) -> (i32, i32) {
    %c0_i32 = arith.constant 0 : i32
    %c0_i32_0 = arith.constant 0 : i32
    return %arg0, %c0_i32 : i32, i32
  }
  func.func @transform_1(%arg0: i32) -> (i32, i32, i32) {
    %c0_i32 = arith.constant 0 : i32
    %c0_i32_0 = arith.constant 0 : i32
    %c0_i32_1 = arith.constant 0 : i32
    %c0_i32_2 = arith.constant 0 : i32
    return %c0_i32, %c0_i32_0, %c0_i32_1 : i32, i32, i32
  }
  func.func @transform_2(%arg0: i32) -> (i32, i32) {
    %c0_i32 = arith.constant 0 : i32
    %c0_i32_0 = arith.constant 0 : i32
    %c0_i32_1 = arith.constant 0 : i32
    return %c0_i32, %c0_i32_0 : i32, i32
  }
  func.func @transform_3(%arg0: i32) -> (i32, i32, i32) {
    %c0_i32 = arith.constant 0 : i32
    %c0_i32_0 = arith.constant 0 : i32
    %c0_i32_1 = arith.constant 0 : i32
    return %arg0, %c0_i32, %c0_i32_0 : i32, i32, i32
  }
}

</mosaic_0001>

<bundles_post_ra>
// kernel: tpu_custom_call.1
= control target key start
LH: loop header
LB: loop body
LE: loop exit
PB: predicated region body
PF: predicated region fallthrough
CT: control target
= control target key end

     0   :  { %8 = vsyncpa [#allocation3], 0  ;;  %s515_s0 = inlined_call_operand.hbm [shape: f32[128,128], index: 0, kind: input, shape index: {}]   ;;  %s516_s1 = inlined_call_operand.hbm [shape: f32[2,128,128], index: 1, kind: input, shape index: {}]   ;;  %s517_s2 = inlined_call_operand.hbm [shape: f32[4,128], index: 2, kind: input, shape index: {}]   ;;  %s518_s3 = inlined_call_operand.hbm [shape: f32[1,1,128], index: 3, kind: output, shape index: {}]  }
   0x1   :  { %9 = vsyncpa [#allocation6], 0 }
   0x2   :  { %10 = vsyncpa [#allocation4], 0  ;;  %s28_s14 = sshll.u32 %s516_s1, 4  ;;  %s473_s15 = smov [#allocation5]   ;;  %s29_s14 = int_to_ptr.hbm [resolvable:$true] %s28_s14 }
   0x3   :  { %s30_s16 = sshll.u32 %s473_s15, 4  ;;  %s15_s19 = sshll.u32 %s515_s0, 4  ;;  %s31_s16 = int_to_ptr.vmem [resolvable:$true] %s30_s16  ;;  %s16_s19 = int_to_ptr.hbm [resolvable:$true] %s15_s19 }
   0x4   :  { %s474_s20 = smov 128   ;;  %s475_s21 = smov 8  }
   0x5   :  { %36 = dma.hbm_to_vmem [thread:$0]  %s29_s14, 4096, %s31_s16, [#allocation6], %s474_s20, %s474_s20, %s475_s21  }
   0x6   :  { %s476_s22 = smov [#allocation2]   ;;  %s42_s26 = sshll.u32 %s517_s2, 4  ;;  %s43_s26 = int_to_ptr.hbm [resolvable:$true] %s42_s26 }
   0x7   :  { %s17_s23 = sshll.u32 %s476_s22, 4  ;;  %s477_s1 = smov [#allocation7]   ;;  %s18_s23 = int_to_ptr.vmem [resolvable:$true] %s17_s23 }
   0x8   :  { %23 = dma.hbm_to_vmem [thread:$0]  %s16_s19, 2048, %s18_s23, [#allocation3], %s474_s20, %s474_s20, %s475_s21  }
   0x9   :  { %s44_s27 = sshll.u32 %s477_s1, 4  ;;  %s45_s27 = int_to_ptr.vmem [resolvable:$true] %s44_s27 }
   0xa   :  { %47 = dma.hbm_to_vmem [thread:$0]  %s43_s26, 64, %s45_s27, [#allocation6]  }
   0xb   :  { %467 = dma.done.wait [#allocation3], 2048  }
   0xc   :  { %468 = vsyncadd [#allocation3], 4294965248 }
   0xd   :  { %469 = dma.done.wait [#allocation6], 4160  }
   0xe   :  { %470 = vsyncadd [#allocation6], 4294963136  ;;  %v91_v0 = vld [vmem:[#allocation5 + $0x78] sm:$0xff]  ;;  %v90_v1 = vld [vmem:[#allocation5 + $0x70] sm:$0xff]  ;;  %s479_s0 = smov [#allocation8]   ;;  %s329_s30 = sshll.u32 %s518_s3, 4  ;;  %s330_s30 = int_to_ptr.hbm [resolvable:$true] %s329_s30 }
   0xf   :  { %94 = vmatpush.msra.mxu0 %v91_v0  ;;  %341 = vmatpush.msra.mxu3 %v91_v0  ;;  %v89_v2 = vld [vmem:[#allocation5 + $0x68] sm:$0xff]  ;;  %v88_v3 = vld [vmem:[#allocation5 + $0x60] sm:$0xff]  ;;  %v87_v4 = vld [vmem:[#allocation5 + $0x58] sm:$0xff]  ;;  %s327_s2 = sshll.u32 %s479_s0, 4  ;;  %s328_s2 = int_to_ptr.vmem [resolvable:$true] %s327_s2 }
  0x10   :  { %v86_v5 = vld [vmem:[#allocation5 + $0x50] sm:$0xff]  ;;  %v85_v6 = vld [vmem:[#allocation5 + $0x48] sm:$0xff]  ;;  %v84_v7 = vld [vmem:[#allocation5 + $0x40] sm:$0xff] }
  0x11   :  { %95 = vmatpush.msra.mxu0 %v90_v1  ;;  %342 = vmatpush.msra.mxu3 %v90_v1  ;;  %v83_v8 = vld [vmem:[#allocation5 + $0x38] sm:$0xff]  ;;  %v82_v9 = vld [vmem:[#allocation5 + $0x30] sm:$0xff]  ;;  %v81_v10 = vld [vmem:[#allocation5 + $0x28] sm:$0xff] }
  0x12   :  { %v80_v11 = vld [vmem:[#allocation5 + $0x20] sm:$0xff]  ;;  %v79_v12 = vld [vmem:[#allocation5 + $0x18] sm:$0xff]  ;;  %v78_v13 = vld [vmem:[#allocation5 + $0x10] sm:$0xff] }
  0x13   :  { %96 = vmatpush.msra.mxu0 %v89_v2  ;;  %343 = vmatpush.msra.mxu3 %v89_v2  ;;  %v77_v14 = vld [vmem:[#allocation5 + $0x8] sm:$0xff]  ;;  %v76_v15 = vld [vmem:[#allocation5] sm:$0xff]  ;;  %v62_v18 = vld [vmem:[#allocation2 + $0x10] sm:$0xff] }
  0x14   :  { %v60_v16 = vld [vmem:[#allocation2] sm:$0xff]  ;;  %v61_v17 = vld [vmem:[#allocation2 + $0x8] sm:$0xff]  ;;  %v63_v19 = vld [vmem:[#allocation2 + $0x18] sm:$0xff] }
  0x15   :  { %97 = vmatpush.msra.mxu0 %v88_v3  ;;  %344 = vmatpush.msra.mxu3 %v88_v3  ;;  %v64_v20 = vld [vmem:[#allocation2 + $0x20] sm:$0xff]  ;;  %v65_v21 = vld [vmem:[#allocation2 + $0x28] sm:$0xff]  ;;  %v70_v22 = vld [vmem:[#allocation2 + $0x50] sm:$0xff] }
  0x16   :  { %v191_v23 = vld [vmem:[#allocation5 + $0xf8] sm:$0xff]  ;;  %v190_v24 = vld [vmem:[#allocation5 + $0xf0] sm:$0xff]  ;;  %v189_v25 = vld [vmem:[#allocation5 + $0xe8] sm:$0xff] }
  0x17   :  { %98 = vmatpush.msra.mxu0 %v87_v4  ;;  %345 = vmatpush.msra.mxu3 %v87_v4  ;;  %v66_v26 = vld [vmem:[#allocation2 + $0x30] sm:$0xff]  ;;  %v188_v27 = vld [vmem:[#allocation5 + $0xe0] sm:$0xff]  ;;  %v71_v28 = vld [vmem:[#allocation2 + $0x58] sm:$0xff] }
  0x18   :  { %194 = vmatpush.msra.mxu1 %v191_v23  ;;  %v187_v29 = vld [vmem:[#allocation5 + $0xd8] sm:$0xff]  ;;  %v186_v30 = vld [vmem:[#allocation5 + $0xd0] sm:$0xff]  ;;  %v185_v31 = vld [vmem:[#allocation5 + $0xc8] sm:$0xff] }
  0x19   :  { %99 = vmatpush.msra.mxu0 %v86_v5  ;;  %346 = vmatpush.msra.mxu3 %v86_v5  ;;  %v67_v32 = vld [vmem:[#allocation2 + $0x38] sm:$0xff]  ;;  %v184_v33 = vld [vmem:[#allocation5 + $0xc0] sm:$0xff]  ;;  %v182_v36 = vld [vmem:[#allocation5 + $0xb0] sm:$0xff] }
  0x1a   :  { %195 = vmatpush.msra.mxu1 %v190_v24  ;;  %v72_v34 = vld [vmem:[#allocation2 + $0x60] sm:$0xff]  ;;  %v183_v35 = vld [vmem:[#allocation5 + $0xb8] sm:$0xff]  ;;  %v181_v37 = vld [vmem:[#allocation5 + $0xa8] sm:$0xff] }
  0x1b   :  { %100 = vmatpush.msra.mxu0 %v85_v6  ;;  %347 = vmatpush.msra.mxu3 %v85_v6  ;;  %v68_v38 = vld [vmem:[#allocation2 + $0x40] sm:$0xff]  ;;  %v73_v40 = vld [vmem:[#allocation2 + $0x68] sm:$0xff]  ;;  %v179_v41 = vld [vmem:[#allocation5 + $0x98] sm:$0xff] }
  0x1c   :  { %196 = vmatpush.msra.mxu1 %v189_v25  ;;  %v180_v39 = vld [vmem:[#allocation5 + $0xa0] sm:$0xff]  ;;  %v69_v42 = vld [vmem:[#allocation2 + $0x48] sm:$0xff]  ;;  %v74_v43 = vld [vmem:[#allocation2 + $0x70] sm:$0xff] }
  0x1d   :  { %101 = vmatpush.msra.mxu0 %v84_v7  ;;  %348 = vmatpush.msra.mxu3 %v84_v7  ;;  %v75_v44 = vld [vmem:[#allocation2 + $0x78] sm:$0xff]  ;;  %v178_v45 = vld [vmem:[#allocation5 + $0x90] sm:$0xff]  ;;  %v177_v46 = vld [vmem:[#allocation5 + $0x88] sm:$0xff] }
  0x1e   :  { %197 = vmatpush.msra.mxu1 %v188_v27  ;;  %v176_v47 = vld [vmem:[#allocation5 + $0x80] sm:$0xff] }
  0x1f   :  { %102 = vmatpush.msra.mxu0 %v83_v8  ;;  %349 = vmatpush.msra.mxu3 %v83_v8  ;;  %v365_v48 = vld [vmem:[#allocation7] ss:$0 sm:$0xff] }
  0x20   :  { %198 = vmatpush.msra.mxu1 %v187_v29 }
  0x21   :  { %103 = vmatpush.msra.mxu0 %v82_v9  ;;  %350 = vmatpush.msra.mxu3 %v82_v9 }
  0x22   :  { %199 = vmatpush.msra.mxu1 %v186_v30 }
  0x23   :  { %104 = vmatpush.msra.mxu0 %v81_v10  ;;  %351 = vmatpush.msra.mxu3 %v81_v10 }
  0x24   :  { %200 = vmatpush.msra.mxu1 %v185_v31 }
  0x25   :  { %105 = vmatpush.msra.mxu0 %v80_v11  ;;  %352 = vmatpush.msra.mxu3 %v80_v11 }
  0x26   :  { %201 = vmatpush.msra.mxu1 %v184_v33 }
  0x27   :  { %106 = vmatpush.msra.mxu0 %v79_v12  ;;  %353 = vmatpush.msra.mxu3 %v79_v12 }
  0x28   :  { %202 = vmatpush.msra.mxu1 %v183_v35 }
  0x29   :  { %107 = vmatpush.msra.mxu0 %v78_v13  ;;  %354 = vmatpush.msra.mxu3 %v78_v13 }
  0x2a   :  { %203 = vmatpush.msra.mxu1 %v182_v36 }
  0x2b   :  { %108 = vmatpush.msra.mxu0 %v77_v14  ;;  %355 = vmatpush.msra.mxu3 %v77_v14 }
  0x2c   :  { %204 = vmatpush.msra.mxu1 %v181_v37 }
  0x2d   :  { %109 = vmatpush.msra.mxu0 %v76_v15  ;;  %356 = vmatpush.msra.mxu3 %v76_v15 }
  0x2e   :  { %110 = vmatmul.f32.vlgmr.msra.gmra.mxu0 %v60_v16  ;;  %140 = vmatmul.f32.vlgmr.msra.gmra.mxu3 %v70_v22 }
  0x2f   :  { %205 = vmatpush.msra.mxu1 %v180_v39 }
  0x31   :  { %206 = vmatpush.msra.mxu1 %v179_v41 }
  0x33   :  { %207 = vmatpush.msra.mxu1 %v178_v45 }
  0x35   :  { %208 = vmatpush.msra.mxu1 %v177_v46 }
  0x36   :  { %113 = vmatmul.f32.gmra.mxu0 %v61_v17  ;;  %143 = vmatmul.f32.gmra.mxu3 %v71_v28 }
  0x37   :  { %209 = vmatpush.msra.mxu1 %v176_v47 }
  0x3e   :  { %116 = vmatmul.f32.gmra.mxu0 %v62_v18  ;;  %146 = vmatmul.f32.gmra.mxu3 %v72_v34 }
  0x46   :  { %119 = vmatmul.f32.gmra.mxu0 %v63_v19  ;;  %149 = vmatmul.f32.gmra.mxu3 %v73_v40 }
  0x4e   :  { %122 = vmatmul.f32.gmra.mxu0 %v64_v20  ;;  %152 = vmatmul.f32.gmra.mxu3 %v74_v43 }
  0x56   :  { %125 = vmatmul.f32.gmra.mxu0 %v65_v21  ;;  %155 = vmatmul.f32.gmra.mxu3 %v75_v44 }
  0x5e   :  { %128 = vmatmul.f32.gmra.mxu0 %v66_v26 }
  0x66   :  { %131 = vmatmul.f32.gmra.mxu0 %v67_v32 }
  0x6e   :  { %134 = vmatmul.f32.gmra.mxu0 %v68_v38 }
  0x76   :  { %137 = vmatmul.f32.gmra.mxu0 %v69_v42 }
  0xab   :  { %v111_v49 = vpop.f32.mrf.mxu0 }
  0xac   :  { %v112_v50 = vadd.f32 %v365_v48, %v111_v49  ;;  %v366_v49 = vld [vmem:[#allocation7 + $0x1] ss:$0 sm:$0xff] }
  0xae   :  { %v159_v51 = vmax.f32 %v112_v50, 0.0 }
  0xb0   :  { %210 = vmatmul.f32.vlgmr.msra.gmra.mxu1 %v159_v51 }
  0xb1   :  { %v141_v10 = vpop.f32.mrf.mxu3 }
  0xb2   :  { %v142_v17 = vadd.f32 %v365_v48, %v141_v10 }
  0xb3   :  { %v114_v52 = vpop.f32.mrf.mxu0 }
  0xb4   :  { %v115_v53 = vadd.f32 %v365_v48, %v114_v52  ;;  %v169_v18 = vmax.f32 %v142_v17, 0.0 }
  0xb6   :  { %v160_v54 = vmax.f32 %v115_v53, 0.0 }
  0xb8   :  { %213 = vmatmul.f32.gmra.mxu1 %v160_v54 }
  0xb9   :  { %v144_v15 = vpop.f32.mrf.mxu3 }
  0xba   :  { %v145_v20 = vadd.f32 %v365_v48, %v144_v15 }
  0xbb   :  { %v117_v55 = vpop.f32.mrf.mxu0 }
  0xbc   :  { %v118_v56 = vadd.f32 %v365_v48, %v117_v55  ;;  %v170_v21 = vmax.f32 %v145_v20, 0.0  ;;  %v275_v20 = vld [vmem:[#allocation7 + $0x2] sm:$0x1] }
  0xbe   :  { %v161_v57 = vmax.f32 %v118_v56, 0.0 }
  0xc0   :  { %216 = vmatmul.f32.gmra.mxu1 %v161_v57 }
  0xc1   :  { %v147_v19 = vpop.f32.mrf.mxu3 }
  0xc2   :  { %v148_v22 = vadd.f32 %v365_v48, %v147_v19 }
  0xc3   :  { %v120_v58 = vpop.f32.mrf.mxu0 }
  0xc4   :  { %v121_v59 = vadd.f32 %v365_v48, %v120_v58  ;;  %v171_v24 = vmax.f32 %v148_v22, 0.0 }
  0xc6   :  { %v162_v60 = vmax.f32 %v121_v59, 0.0 }
  0xc8   :  { %219 = vmatmul.f32.gmra.mxu1 %v162_v60 }
  0xc9   :  { %v150_v23 = vpop.f32.mrf.mxu3 }
  0xca   :  { %v151_v25 = vadd.f32 %v365_v48, %v150_v23 }
  0xcb   :  { %v123_v61 = vpop.f32.mrf.mxu0 }
  0xcc   :  { %v124_v62 = vadd.f32 %v365_v48, %v123_v61  ;;  %v172_v27 = vmax.f32 %v151_v25, 0.0 }
  0xce   :  { %v163_v63 = vmax.f32 %v124_v62, 0.0 }
  0xd0   :  { %222 = vmatmul.f32.gmra.mxu1 %v163_v63 }
  0xd1   :  { %v153_v26 = vpop.f32.mrf.mxu3 }
  0xd2   :  { %v154_v28 = vadd.f32 %v365_v48, %v153_v26 }
  0xd3   :  { %v126_v0 = vpop.f32.mrf.mxu0 }
  0xd4   :  { %v127_v1 = vadd.f32 %v365_v48, %v126_v0  ;;  %v173_v29 = vmax.f32 %v154_v28, 0.0 }
  0xd6   :  { %v164_v2 = vmax.f32 %v127_v1, 0.0 }
  0xd8   :  { %225 = vmatmul.f32.gmra.mxu1 %v164_v2 }
  0xd9   :  { %v156_v30 = vpop.f32.mrf.mxu3 }
  0xda   :  { %v157_v31 = vadd.f32 %v365_v48, %v156_v30 }
  0xdb   :  { %v129_v3 = vpop.f32.mrf.mxu0 }
  0xdc   :  { %v130_v4 = vadd.f32 %v365_v48, %v129_v3  ;;  %v174_v32 = vmax.f32 %v157_v31, 0.0 }
  0xde   :  { %v165_v5 = vmax.f32 %v130_v4, 0.0 }
  0xe0   :  { %228 = vmatmul.f32.gmra.mxu1 %v165_v5  ;;  %v276_v5 = vld [vmem:[#allocation7 + $0x3] sm:$0x1] }
  0xe3   :  { %v132_v6 = vpop.f32.mrf.mxu0 }
  0xe4   :  { %v133_v7 = vadd.f32 %v365_v48, %v132_v6  ;;  %v478_v6 = vmov 0  }
  0xe5   :  { %364 = vset.pattern.permute.xlu0 %v478_v6 }
  0xe6   :  { %v166_v8 = vmax.f32 %v133_v7, 0.0  ;;  %279 = vperm.xlu0 %364, %v276_v5  }
  0xe8   :  { %231 = vmatmul.f32.gmra.mxu1 %v166_v8 }
  0xeb   :  { %v135_v9 = vpop.f32.mrf.mxu0 }
  0xec   :  { %v136_v11 = vadd.f32 %v365_v48, %v135_v9 }
  0xee   :  { %v167_v12 = vmax.f32 %v136_v11, 0.0 }
  0xf0   :  { %234 = vmatmul.f32.gmra.mxu1 %v167_v12 }
  0xf3   :  { %v138_v13 = vpop.f32.mrf.mxu0 }
  0xf4   :  { %v139_v14 = vadd.f32 %v365_v48, %v138_v13 }
  0xf6   :  { %v168_v16 = vmax.f32 %v139_v14, 0.0 }
  0xf8   :  { %237 = vmatmul.f32.gmra.mxu1 %v168_v16 }
 0x100   :  { %240 = vmatmul.f32.gmra.mxu1 %v169_v18 }
 0x108   :  { %243 = vmatmul.f32.gmra.mxu1 %v170_v21 }
 0x110   :  { %246 = vmatmul.f32.gmra.mxu1 %v171_v24 }
 0x118   :  { %249 = vmatmul.f32.gmra.mxu1 %v172_v27 }
 0x120   :  { %252 = vmatmul.f32.gmra.mxu1 %v173_v29 }
 0x128   :  { %255 = vmatmul.f32.gmra.mxu1 %v174_v32 }
 0x12d   :  { %v509_v33 = vpop.f32.mrf.mxu1 }
 0x12e   :  { %v212_v17 = vadd.f32 %v366_v49, %v509_v33 }
 0x130   :  { %v259_v19 = vmax.f32 %v212_v17, 0.0 }
 0x135   :  { %v214_v34 = vpop.f32.mrf.mxu1 }
 0x136   :  { %v215_v15 = vadd.f32 %v366_v49, %v214_v34 }
 0x138   :  { %v260_v18 = vmax.f32 %v215_v15, 0.0 }
 0x13d   :  { %v217_v35 = vpop.f32.mrf.mxu1 }
 0x13e   :  { %v218_v13 = vadd.f32 %v366_v49, %v217_v35 }
 0x140   :  { %v261_v16 = vmax.f32 %v218_v13, 0.0 }
 0x145   :  { %v220_v36 = vpop.f32.mrf.mxu1 }
 0x146   :  { %v221_v11 = vadd.f32 %v366_v49, %v220_v36 }
 0x148   :  { %v262_v14 = vmax.f32 %v221_v11, 0.0 }
 0x14d   :  { %v223_v37 = vpop.f32.mrf.mxu1 }
 0x14e   :  { %v224_v9 = vadd.f32 %v366_v49, %v223_v37 }
 0x150   :  { %v263_v12 = vmax.f32 %v224_v9, 0.0 }
 0x155   :  { %v226_v38 = vpop.f32.mrf.mxu1 }
 0x156   :  { %v227_v7 = vadd.f32 %v366_v49, %v226_v38 }
 0x158   :  { %v264_v10 = vmax.f32 %v227_v7, 0.0  ;;  %v280_v21 = vpop.permute.xlu0 %279 }
 0x15d   :  { %v229_v39 = vpop.f32.mrf.mxu1 }
 0x15e   :  { %v230_v3 = vadd.f32 %v366_v49, %v229_v39 }
 0x160   :  { %v265_v8 = vmax.f32 %v230_v3, 0.0 }
 0x165   :  { %v232_v40 = vpop.f32.mrf.mxu1 }
 0x166   :  { %v233_v1 = vadd.f32 %v366_v49, %v232_v40 }
 0x168   :  { %v266_v4 = vmax.f32 %v233_v1, 0.0 }
 0x16d   :  { %v235_v41 = vpop.f32.mrf.mxu1 }
 0x16e   :  { %v236_v63 = vadd.f32 %v366_v49, %v235_v41 }
 0x170   :  { %v267_v2 = vmax.f32 %v236_v63, 0.0 }
 0x175   :  { %v238_v42 = vpop.f32.mrf.mxu1 }
 0x176   :  { %v239_v61 = vadd.f32 %v366_v49, %v238_v42 }
 0x178   :  { %v268_v0 = vmax.f32 %v239_v61, 0.0 }
 0x17d   :  { %v241_v43 = vpop.f32.mrf.mxu1 }
 0x17e   :  { %v242_v59 = vadd.f32 %v366_v49, %v241_v43 }
 0x180   :  { %v269_v62 = vmax.f32 %v242_v59, 0.0 }
 0x185   :  { %v244_v44 = vpop.f32.mrf.mxu1 }
 0x186   :  { %v245_v57 = vadd.f32 %v366_v49, %v244_v44 }
 0x188   :  { %v270_v60 = vmax.f32 %v245_v57, 0.0 }
 0x18d   :  { %v247_v45 = vpop.f32.mrf.mxu1 }
 0x18e   :  { %v248_v55 = vadd.f32 %v366_v49, %v247_v45 }
 0x190   :  { %v271_v58 = vmax.f32 %v248_v55, 0.0 }
 0x195   :  { %v250_v46 = vpop.f32.mrf.mxu1 }
 0x196   :  { %v251_v53 = vadd.f32 %v366_v49, %v250_v46 }
 0x198   :  { %v272_v56 = vmax.f32 %v251_v53, 0.0 }
 0x19d   :  { %v253_v47 = vpop.f32.mrf.mxu1 }
 0x19e   :  { %v254_v51 = vadd.f32 %v366_v49, %v253_v47 }
 0x1a0   :  { %v273_v54 = vmax.f32 %v254_v51, 0.0 }
 0x1a5   :  { %v256_v48 = vpop.f32.mrf.mxu1 }
 0x1a6   :  { %v257_v50 = vadd.f32 %v366_v49, %v256_v48 }
 0x1a8   :  { %v274_v52 = vmax.f32 %v257_v50, 0.0 }
 0x1aa   :  { %282 = vmatpush.xpose.msra.mxu2 %v274_v52 }
 0x1ae   :  { %283 = vmatpush.xpose.msra.mxu2 %v273_v54 }
 0x1b2   :  { %284 = vmatpush.xpose.msra.mxu2 %v272_v56 }
 0x1b6   :  { %285 = vmatpush.xpose.msra.mxu2 %v271_v58 }
 0x1ba   :  { %286 = vmatpush.xpose.msra.mxu2 %v270_v60 }
 0x1be   :  { %287 = vmatpush.xpose.msra.mxu2 %v269_v62 }
 0x1c2   :  { %288 = vmatpush.xpose.msra.mxu2 %v268_v0 }
 0x1c6   :  { %289 = vmatpush.xpose.msra.mxu2 %v267_v2 }
 0x1ca   :  { %290 = vmatpush.xpose.msra.mxu2 %v266_v4 }
 0x1ce   :  { %291 = vmatpush.xpose.msra.mxu2 %v265_v8 }
 0x1d2   :  { %292 = vmatpush.xpose.msra.mxu2 %v264_v10 }
 0x1d6   :  { %293 = vmatpush.xpose.msra.mxu2 %v263_v12 }
 0x1da   :  { %294 = vmatpush.xpose.msra.mxu2 %v262_v14 }
 0x1de   :  { %295 = vmatpush.xpose.msra.mxu2 %v261_v16 }
 0x1e2   :  { %296 = vmatpush.xpose.msra.mxu2 %v260_v18 }
 0x1e6   :  { %297 = vmatpush.xpose.msra.mxu2 %v259_v19 }
 0x1e9   :  { %298 = vmatmul.f32.vlgmr.msra.gmra.mxu2 %v275_v20 }
 0x26c   :  { %v299_v22 = vpop.f32.mrf.mxu2 }
 0x26d   :  { %v300_v23 = vadd.f32 %v299_v22, %v280_v21 }
 0x26f   :  { %v340_v24 = vmul.f32 -1.442695, %v300_v23 }
 0x271   :  { %367 = vpow2.f32 %v340_v24 }
 0x277   :  { %v368_v25 = vpop.eup %367 }
 0x278   :  { %v305_v26 = vadd.f32 1.0, %v368_v25 }
 0x27a   :  { %369 = vrcp.f32 %v305_v26  ;;  %v317_v30 = vand.u32 2147483648, %v305_v26  ;;  %v315_v32 = vand.u32 2147483647, %v305_v26  ;;  %vm311_vm1 = vweird.f32 %v305_v26 }
 0x27c   :  { %v318_v34 = vor.u32 1.1754944e-38, %v317_v30  ;;  %vm316_vm3 = vcmp.eq.f32.partialorder %v315_v32, 8.507059e+37 }
 0x280   :  { %v370_v27 = vpop.eup %369 }
 0x281   :  { %v307_v28 = vmul.f32 %v370_v27, %v305_v26  ;;  %vm312_vm0 = vweird.f32 %v370_v27 }
 0x282   :  { %vm313_vm2 = vmor %vm311_vm1, %vm312_vm0 }
 0x283   :  { %v308_v29 = vsub.f32 1.0, %v307_v28 }
 0x285   :  { %v309_v31 = vmul.f32 %v370_v27, %v308_v29 }
 0x287   :  { %v310_v33 = vadd.f32 %v370_v27, %v309_v31 }
 0x289   :  { %v314_v35 = vsel %vm313_vm2, %v370_v27, %v310_v33 }
 0x28a   :  { %v319_v36 = vsel %vm316_vm3, %v318_v34, %v314_v35 }
 0x28b   :  { %321 = vst [vmem:[#allocation8] sm:$0x1] %v319_v36 }
 0x28c   :  { %332 = dma.vmem_to_hbm [thread:$0]  %s328_s2, 16, %s330_s30, [#allocation4]  }
 0x28d   :  { %471 = dma.done.wait [#allocation4], 16  }
 0x28e   :  { %472 = vsyncadd [#allocation4], 4294967280 }
 0x28f   :  { %337 = vsyncpa [#allocation3], 1 }
 0x290   :  { %338 = vsyncpa [#allocation6], 1 }
 0x291   :  { %339 = vsyncpa [#allocation4], 1 }

</bundles_post_ra>
